<compile_context>
chip_gen: v6e
topology: v6e:2x2x1
jax: 0.10.0
libtpu: 0.0.40
codegen_flags: <defaults>
</compile_context>

<pallas_src>
import jax
import jax.numpy as jnp
from jax.experimental import pallas as pl
from jax.experimental.pallas import tpu as pltpu

# ---------------- model hyper-parameters (match the reference module) --------
VOCAB = 32          # input_size
EMB = 16            # embedding_size
HID = 16            # hidden_size
BATCH = 8
SEQ = 6             # demo sequence length
CHUNK = 4           # time steps unrolled per grid iteration


# ---------------- Pallas kernel ----------------------------------------------
def encoder_gru_seq_kernel(ids_ref,    # SMEM (T_pad, B) int32  (scalar prefetch)
                           wtop_ref,   # VMEM (V, 3H) f32  emb@W_ih^T + b_ih (+b_hh r/z)
                           wbot_ref,   # VMEM (H, 3H) f32  W_hh^T (gate order r|z|n)
                           bhhn_ref,   # VMEM (1, H)  f32  b_hh for the n gate
                           h0_ref,     # VMEM (B, H)  f32  initial hidden
                           out_ref,    # VMEM (U, B, H) f32 per-chunk output block
                           h_scr):     # VMEM (B, H)  f32  hidden carry
    tg = pl.program_id(0)
    B, H = h_scr.shape
    V = wtop_ref.shape[0]
    U = out_ref.shape[0]                       # time steps per grid iteration

    # --- carry init (first grid step only) -----------------------------------
    @pl.when(tg == 0)
    def _():
        h_scr[...] = h0_ref[...]

    # --- loop-invariant loads / constants (hoisted out of the unrolled loop) -
    wtop = wtop_ref[...]                                   # (V, 3H)
    wbot = wbot_ref[...]                                   # (H, 3H)
    bhhn = bhhn_ref[...]                                   # (1, H)
    sub = jax.lax.broadcasted_iota(jnp.int32, (B, 1), 0)   # batch-row ids
    lane = jax.lax.broadcasted_iota(jnp.int32, (B, V), 1)  # vocab lane ids

    h = h_scr[...]                                         # (B, H)

    # --- U unrolled GRU steps -------------------------------------------------
    for u in range(U):
        t = tg * U + u

        # token ids: (B,1) vector assembled straight from SMEM scalars
        ids_vec = jnp.zeros((B, 1), jnp.int32)
        for b in range(B):
            ids_vec = jnp.where(sub == b, ids_ref[t, b], ids_vec)

        # exact embedding gather as a 0/1 one-hot matmul against the fused table
        onehot = (lane == ids_vec).astype(jnp.float32)                 # (B, V)

        gi = jnp.dot(onehot, wtop, preferred_element_type=jnp.float32)  # (B,3H)
        gh = jnp.dot(h, wbot, preferred_element_type=jnp.float32)       # (B,3H)

        # GRU gate math (PyTorch semantics, gate order r | z | n)
        s = gi + gh                  # valid for r and z (all biases folded in)
        r = jax.nn.sigmoid(s[:, 0:H])
        z = jax.nn.sigmoid(s[:, H:2 * H])
        n = jnp.tanh(gi[:, 2 * H:3 * H] + r * (gh[:, 2 * H:3 * H] + bhhn))
        h = (1.0 - z) * n + z * h                                       # (B, H)

        out_ref[u, :, :] = h         # one store per step

    h_scr[...] = h                   # carry to the next chunk


# ---------------- weight preprocessing (done once, outside the kernel) --------
def _gru_tables(params):
    emb, w_ih, w_hh = params["emb"], params["w_ih"], params["w_hh"]
    b_ih, b_hh = params["b_ih"], params["b_hh"]
    # fold embedding lookup + input projection + biases into one table.
    emb_gates = emb @ w_ih.T + b_ih[None, :]                           # (V, 3H)
    # b_hh folds for r and z (they see gi+gh); the n gate keeps b_hh_n inside
    # the r-multiplication, exactly like PyTorch.
    bhh_fold = jnp.concatenate([b_hh[:2 * HID], jnp.zeros((HID,), b_hh.dtype)])
    w_top = (emb_gates + bhh_fold[None, :]).astype(jnp.float32)        # (V, 3H)
    w_bot = w_hh.T.astype(jnp.float32)                                 # (H, 3H)
    b_hh_n = b_hh[2 * HID:].reshape(1, HID).astype(jnp.float32)        # (1, H)
    return w_top, w_bot, b_hh_n


# ---------------- wrappers -----------------------------------------------------
def encoder_rnn_encode(token_ids, params, hidden=None, chunk=CHUNK):
    """Run the GRU over a whole (T, B) int sequence in ONE pallas_call.
    Returns (output (T,B,H), hidden (1,B,H)) — identical to calling the
    PyTorch forward T times, feeding the hidden state back in."""
    T, B = token_ids.shape
    if hidden is None:
        h0 = jnp.zeros((B, HID), jnp.float32)
    else:
        h0 = jnp.asarray(hidden, jnp.float32).reshape(B, HID)

    chunk = max(1, min(chunk, T))
    n_chunks = -(-T // chunk)
    T_pad = n_chunks * chunk

    ids = token_ids.astype(jnp.int32)
    if T_pad != T:
        # GRU is causal: padded (token 0) steps only produce trailing outputs
        # that we discard, earlier outputs are untouched.
        ids = jnp.pad(ids, ((0, T_pad - T), (0, 0)))

    w_top, w_bot, b_hh_n = _gru_tables(params)

    def resident(shape):
        return pl.BlockSpec(shape, lambda tg, ids_ref: (0,) * len(shape))

    out = pl.pallas_call(
        encoder_gru_seq_kernel,
        out_shape=jax.ShapeDtypeStruct((T_pad, B, HID), jnp.float32),
        grid_spec=pltpu.PrefetchScalarGridSpec(
            num_scalar_prefetch=1,                 # token ids -> SMEM
            grid=(n_chunks,),                      # time-chunk loop
            in_specs=[
                resident((VOCAB, 3 * HID)),        # fused emb+W_ih table (resident)
                resident((HID, 3 * HID)),          # W_hh^T (resident)
                resident((1, HID)),                # b_hh_n (resident)
                resident((B, HID)),                # h0 (resident, read at tg==0)
            ],
            out_specs=pl.BlockSpec((chunk, B, HID),
                                   lambda tg, ids_ref: (tg, 0, 0)),
            scratch_shapes=[pltpu.VMEM((B, HID), jnp.float32)],   # hidden carry
        ),
        compiler_params=pltpu.CompilerParams(
            dimension_semantics=("arbitrary",)),   # sequential time chunks
    )(ids, w_top, w_bot, b_hh_n, h0)

    out = out[:T]
    return out, out[T - 1:T]                       # output, final hidden


def encoder_rnn_forward(input_ids, params, hidden=None):
    """Mirrors EncoderRNN.forward: input_ids (B,) int -> (output, hidden),
    each of shape (1, B, hidden_size)."""
    out, hid = encoder_rnn_encode(input_ids.reshape(1, -1), params, hidden)
    return out, hid


# ---------------- deterministic parameter init --------------------------------
def init_params(key):
    k_emb, k_wih, k_whh, k_bih, k_bhh = jax.random.split(key, 5)
    bound = 1.0 / jnp.sqrt(HID)     # PyTorch GRU default: U(-1/sqrt(H), 1/sqrt(H))
    return {
        "emb":  jax.random.normal(k_emb, (VOCAB, EMB), jnp.float32),   # nn.Embedding: N(0,1)
        "w_ih": jax.random.uniform(k_wih, (3 * HID, EMB), jnp.float32, -bound, bound),
        "w_hh": jax.random.uniform(k_whh, (3 * HID, HID), jnp.float32, -bound, bound),
        "b_ih": jax.random.uniform(k_bih, (3 * HID,), jnp.float32, -bound, bound),
        "b_hh": jax.random.uniform(k_bhh, (3 * HID,), jnp.float32, -bound, bound),
    }


# ---------------- pure-JAX reference (PyTorch GRU semantics) -------------------
def _reference_step(x_ids, params, h):
    x = params["emb"][x_ids]                                   # (B, E)
    gi = x @ params["w_ih"].T + params["b_ih"]
    gh = h @ params["w_hh"].T + params["b_hh"]
    i_r, i_z, i_n = jnp.split(gi, 3, axis=1)
    h_r, h_z, h_n = jnp.split(gh, 3, axis=1)
    r = jax.nn.sigmoid(i_r + h_r)
    z = jax.nn.sigmoid(i_z + h_z)
    n = jnp.tanh(i_n + r * h_n)
    return (1.0 - z) * n + z * h


def reference_encode(token_ids, params, hidden=None):
    T, B = token_ids.shape
    h = jnp.zeros((B, HID), jnp.float32) if hidden is None else hidden.reshape(B, HID)
    outs = []
    for t in range(T):
        h = _reference_step(token_ids[t], params, h)
        outs.append(h)
    return jnp.stack(outs), h.reshape(1, B, HID)


if __name__ == "__main__":
    key = jax.random.PRNGKey(0)
    params = init_params(key)

    # deterministic token ids in [0, VOCAB)
    ids_seq = jax.random.randint(jax.random.fold_in(key, 1),
                                 (SEQ, BATCH), 0, VOCAB, jnp.int32)

    # --- single-step forward (exactly the PyTorch module's forward) ----------
    out1, hid1 = encoder_rnn_forward(ids_seq[0], params, hidden=None)
    out1 = jax.block_until_ready(out1)
    hid1 = jax.block_until_ready(hid1)
    ref_out1, ref_hid1 = reference_encode(ids_seq[0:1], params, hidden=None)
    assert out1.shape == (1, BATCH, HID) and hid1.shape == (1, BATCH, HID)
    assert jnp.allclose(out1, ref_out1, atol=1e-4, rtol=1e-4)
    assert jnp.allclose(hid1, ref_hid1, atol=1e-4, rtol=1e-4)

    # --- full sequence in ONE pallas_call (chunked time loop in-kernel) ------
    out_seq, hid_seq = encoder_rnn_encode(ids_seq, params, hidden=None)
    out_seq = jax.block_until_ready(out_seq)
    hid_seq = jax.block_until_ready(hid_seq)
    ref_out, ref_hid = reference_encode(ids_seq, params, hidden=None)
    assert out_seq.shape == (SEQ, BATCH, HID) and hid_seq.shape == (1, BATCH, HID)
    assert jnp.allclose(out_seq, ref_out, atol=1e-4, rtol=1e-4)
    assert jnp.allclose(hid_seq, ref_hid, atol=1e-4, rtol=1e-4)

    print("KERNEL_OK")
</pallas_src>

<mosaic_0001>
module attributes {stable_mosaic.version = 11 : i64} {
  func.func @encoder_gru_seq_kernel(%arg0: i32, %arg1: memref<1x8xi32, #tpu.memory_space<smem>>, %arg2: memref<32x48xf32, #tpu.memory_space<vmem>>, %arg3: memref<16x48xf32, #tpu.memory_space<vmem>>, %arg4: memref<1x16xf32, #tpu.memory_space<vmem>>, %arg5: memref<8x16xf32, #tpu.memory_space<vmem>>, %arg6: memref<1x8x16xf32, #tpu.memory_space<vmem>>, %arg7: memref<8x16xf32, #tpu.memory_space<vmem>>) attributes {dimension_semantics = [#tpu.dimension_semantics<arbitrary>], iteration_bounds = array<i64: 1>, scalar_prefetch = 1 : i64, scratch_operands = 1 : i64, tpu.core_type = #tpu.core_type<tc>, window_params = [{pipeline_mode = #tpu.pipeline_mode<synchronous>, transform_indices = @transform_0, window_bounds = array<i64: 32, 48>}, {pipeline_mode = #tpu.pipeline_mode<synchronous>, transform_indices = @transform_1, window_bounds = array<i64: 16, 48>}, {pipeline_mode = #tpu.pipeline_mode<synchronous>, transform_indices = @transform_2, window_bounds = array<i64: 1, 16>}, {pipeline_mode = #tpu.pipeline_mode<synchronous>, transform_indices = @transform_3, window_bounds = array<i64: 8, 16>}, {transform_indices = @transform_4, window_bounds = array<i64: 1, 8, 16>}]} {
    %c0_i32 = arith.constant 0 : i32
    %0 = arith.cmpi eq, %arg0, %c0_i32 : i32
    %1 = arith.extui %0 : i1 to i32
    %c0_i32_0 = arith.constant 0 : i32
    %2 = arith.cmpi ne, %1, %c0_i32_0 : i32
    scf.if %2 {
      %c0_22 = arith.constant 0 : index
      %c0_23 = arith.constant 0 : index
      %95 = vector.load %arg5[%c0_22, %c0_23] : memref<8x16xf32, #tpu.memory_space<vmem>>, vector<8x16xf32>
      %c0_24 = arith.constant 0 : index
      %c0_25 = arith.constant 0 : index
      %96 = vector.load %arg7[%c0_24, %c0_25] : memref<8x16xf32, #tpu.memory_space<vmem>>, vector<8x16xf32>
      tpu.vector_store %arg7[%c0_24, %c0_25], %95 {strides = array<i32>} : memref<8x16xf32, #tpu.memory_space<vmem>>, vector<8x16xf32>,
    } else {
    }
    %c0 = arith.constant 0 : index
    %c0_1 = arith.constant 0 : index
    %3 = vector.load %arg2[%c0, %c0_1] : memref<32x48xf32, #tpu.memory_space<vmem>>, vector<32x48xf32>
    %c0_2 = arith.constant 0 : index
    %c0_3 = arith.constant 0 : index
    %4 = vector.load %arg3[%c0_2, %c0_3] : memref<16x48xf32, #tpu.memory_space<vmem>>, vector<16x48xf32>
    %c0_4 = arith.constant 0 : index
    %c0_5 = arith.constant 0 : index
    %5 = vector.load %arg4[%c0_4, %c0_5] : memref<1x16xf32, #tpu.memory_space<vmem>>, vector<1x16xf32>
    %6 = tpu.iota {dimensions = array<i32: 0>} : vector<8x1xi32>
    %7 = tpu.iota {dimensions = array<i32: 1>} : vector<8x32xi32>
    %c0_6 = arith.constant 0 : index
    %c0_7 = arith.constant 0 : index
    %8 = vector.load %arg7[%c0_6, %c0_7] : memref<8x16xf32, #tpu.memory_space<vmem>>, vector<8x16xf32>
    %c1_i32 = arith.constant 1 : i32
    %9 = arith.muli %arg0, %c1_i32 : i32
    %c0_i32_8 = arith.constant 0 : i32
    %10 = arith.addi %9, %c0_i32_8 : i32
    %c0_i32_9 = arith.constant 0 : i32
    %11 = vector.broadcast %c0_i32_9 : i32 to vector<8x1xi32>
    %c0_i32_10 = arith.constant 0 : i32
    %12 = vector.broadcast %c0_i32_10 : i32 to vector<8x1xi32>
    %13 = arith.cmpi eq, %6, %12 : vector<8x1xi32>
    %14 = arith.index_cast %10 : i32 to index
    %c0_11 = arith.constant 0 : index
    %15 = memref.load %arg1[%14, %c0_11] : memref<1x8xi32, #tpu.memory_space<smem>>
    %16 = vector.broadcast %15 : i32 to vector<8x1xi32>
    %17 = arith.select %13, %16, %11 : vector<8x1xi1>, vector<8x1xi32>
    %c1_i32_12 = arith.constant 1 : i32
    %18 = vector.broadcast %c1_i32_12 : i32 to vector<8x1xi32>
    %19 = arith.cmpi eq, %6, %18 : vector<8x1xi32>
    %20 = arith.index_cast %10 : i32 to index
    %c1 = arith.constant 1 : index
    %21 = memref.load %arg1[%20, %c1] : memref<1x8xi32, #tpu.memory_space<smem>>
    %22 = vector.broadcast %21 : i32 to vector<8x1xi32>
    %23 = arith.select %19, %22, %17 : vector<8x1xi1>, vector<8x1xi32>
    %c2_i32 = arith.constant 2 : i32
    %24 = vector.broadcast %c2_i32 : i32 to vector<8x1xi32>
    %25 = arith.cmpi eq, %6, %24 : vector<8x1xi32>
    %26 = arith.index_cast %10 : i32 to index
    %c2 = arith.constant 2 : index
    %27 = memref.load %arg1[%26, %c2] : memref<1x8xi32, #tpu.memory_space<smem>>
    %28 = vector.broadcast %27 : i32 to vector<8x1xi32>
    %29 = arith.select %25, %28, %23 : vector<8x1xi1>, vector<8x1xi32>
    %c3_i32 = arith.constant 3 : i32
    %30 = vector.broadcast %c3_i32 : i32 to vector<8x1xi32>
    %31 = arith.cmpi eq, %6, %30 : vector<8x1xi32>
    %32 = arith.index_cast %10 : i32 to index
    %c3 = arith.constant 3 : index
    %33 = memref.load %arg1[%32, %c3] : memref<1x8xi32, #tpu.memory_space<smem>>
    %34 = vector.broadcast %33 : i32 to vector<8x1xi32>
    %35 = arith.select %31, %34, %29 : vector<8x1xi1>, vector<8x1xi32>
    %c4_i32 = arith.constant 4 : i32
    %36 = vector.broadcast %c4_i32 : i32 to vector<8x1xi32>
    %37 = arith.cmpi eq, %6, %36 : vector<8x1xi32>
    %38 = arith.index_cast %10 : i32 to index
    %c4 = arith.constant 4 : index
    %39 = memref.load %arg1[%38, %c4] : memref<1x8xi32, #tpu.memory_space<smem>>
    %40 = vector.broadcast %39 : i32 to vector<8x1xi32>
    %41 = arith.select %37, %40, %35 : vector<8x1xi1>, vector<8x1xi32>
    %c5_i32 = arith.constant 5 : i32
    %42 = vector.broadcast %c5_i32 : i32 to vector<8x1xi32>
    %43 = arith.cmpi eq, %6, %42 : vector<8x1xi32>
    %44 = arith.index_cast %10 : i32 to index
    %c5 = arith.constant 5 : index
    %45 = memref.load %arg1[%44, %c5] : memref<1x8xi32, #tpu.memory_space<smem>>
    %46 = vector.broadcast %45 : i32 to vector<8x1xi32>
    %47 = arith.select %43, %46, %41 : vector<8x1xi1>, vector<8x1xi32>
    %c6_i32 = arith.constant 6 : i32
    %48 = vector.broadcast %c6_i32 : i32 to vector<8x1xi32>
    %49 = arith.cmpi eq, %6, %48 : vector<8x1xi32>
    %50 = arith.index_cast %10 : i32 to index
    %c6 = arith.constant 6 : index
    %51 = memref.load %arg1[%50, %c6] : memref<1x8xi32, #tpu.memory_space<smem>>
    %52 = vector.broadcast %51 : i32 to vector<8x1xi32>
    %53 = arith.select %49, %52, %47 : vector<8x1xi1>, vector<8x1xi32>
    %c7_i32 = arith.constant 7 : i32
    %54 = vector.broadcast %c7_i32 : i32 to vector<8x1xi32>
    %55 = arith.cmpi eq, %6, %54 : vector<8x1xi32>
    %56 = arith.index_cast %10 : i32 to index
    %c7 = arith.constant 7 : index
    %57 = memref.load %arg1[%56, %c7] : memref<1x8xi32, #tpu.memory_space<smem>>
    %58 = vector.broadcast %57 : i32 to vector<8x1xi32>
    %59 = arith.select %55, %58, %53 : vector<8x1xi1>, vector<8x1xi32>
    %60 = vector.broadcast %59 : vector<8x1xi32> to vector<8x32xi32>
    %61 = arith.cmpi eq, %7, %60 : vector<8x32xi32>
    %62 = arith.extui %61 : vector<8x32xi1> to vector<8x32xi32>
    %63 = arith.sitofp %62 : vector<8x32xi32> to vector<8x32xf32>
    %cst = arith.constant dense<0.000000e+00> : vector<8x48xf32>
    %64 = tpu.matmul %63, %3, %cst {dimension_numbers = #tpu.dot_dimension_numbers<[1], [0], [0], [1], [0, 0, 1, 1], [], []>} : vector<8x32xf32>, vector<32x48xf32>, vector<8x48xf32> -> vector<8x48xf32>
    %cst_13 = arith.constant dense<0.000000e+00> : vector<8x48xf32>
    %65 = tpu.matmul %8, %4, %cst_13 {dimension_numbers = #tpu.dot_dimension_numbers<[1], [0], [0], [1], [0, 0, 1, 1], [], []>} : vector<8x16xf32>, vector<16x48xf32>, vector<8x48xf32> -> vector<8x48xf32>
    %66 = arith.addf %64, %65 : vector<8x48xf32>
    %67 = vector.extract_strided_slice %66 {offsets = [0, 0], sizes = [8, 16], strides = [1, 1]} : vector<8x48xf32> to vector<8x16xf32>
    %68 = arith.negf %67 : vector<8x16xf32>
    %69 = math.exp %68 : vector<8x16xf32>
    %cst_14 = arith.constant 1.000000e+00 : f32
    %70 = vector.broadcast %cst_14 : f32 to vector<8x16xf32>
    %71 = arith.addf %70, %69 : vector<8x16xf32>
    %72 = arith.divf %70, %71 : vector<8x16xf32>
    %73 = vector.extract_strided_slice %66 {offsets = [0, 16], sizes = [8, 16], strides = [1, 1]} : vector<8x48xf32> to vector<8x16xf32>
    %74 = arith.negf %73 : vector<8x16xf32>
    %75 = math.exp %74 : vector<8x16xf32>
    %cst_15 = arith.constant 1.000000e+00 : f32
    %76 = vector.broadcast %cst_15 : f32 to vector<8x16xf32>
    %77 = arith.addf %76, %75 : vector<8x16xf32>
    %78 = arith.divf %76, %77 : vector<8x16xf32>
    %79 = vector.extract_strided_slice %64 {offsets = [0, 32], sizes = [8, 16], strides = [1, 1]} : vector<8x48xf32> to vector<8x16xf32>
    %80 = vector.extract_strided_slice %65 {offsets = [0, 32], sizes = [8, 16], strides = [1, 1]} : vector<8x48xf32> to vector<8x16xf32>
    %81 = vector.broadcast %5 : vector<1x16xf32> to vector<8x16xf32>
    %82 = arith.addf %80, %81 : vector<8x16xf32>
    %83 = arith.mulf %72, %82 : vector<8x16xf32>
    %84 = arith.addf %79, %83 : vector<8x16xf32>
    %85 = math.tanh %84 : vector<8x16xf32>
    %cst_16 = arith.constant 1.000000e+00 : f32
    %86 = vector.broadcast %cst_16 : f32 to vector<8x16xf32>
    %87 = arith.subf %86, %78 : vector<8x16xf32>
    %88 = arith.mulf %87, %85 : vector<8x16xf32>
    %89 = arith.mulf %78, %8 : vector<8x16xf32>
    %90 = arith.addf %88, %89 : vector<8x16xf32>
    %c0_17 = arith.constant 0 : index
    %c0_18 = arith.constant 0 : index
    %c0_19 = arith.constant 0 : index
    %91 = vector.load %arg6[%c0_17, %c0_18, %c0_19] : memref<1x8x16xf32, #tpu.memory_space<vmem>>, vector<1x8x16xf32>
    %92 = vector.shape_cast %91 : vector<1x8x16xf32> to vector<8x16xf32>
    %93 = vector.shape_cast %90 : vector<8x16xf32> to vector<1x8x16xf32>
    tpu.vector_store %arg6[%c0_17, %c0_18, %c0_19], %93 {strides = array<i32>} : memref<1x8x16xf32, #tpu.memory_space<vmem>>, vector<1x8x16xf32>,
    %c0_20 = arith.constant 0 : index
    %c0_21 = arith.constant 0 : index
    %94 = vector.load %arg7[%c0_20, %c0_21] : memref<8x16xf32, #tpu.memory_space<vmem>>, vector<8x16xf32>
    tpu.vector_store %arg7[%c0_20, %c0_21], %90 {strides = array<i32>} : memref<8x16xf32, #tpu.memory_space<vmem>>, vector<8x16xf32>,
    return
  }
  func.func @transform_0(%arg0: i32, %arg1: memref<1x8xi32, #tpu.memory_space<smem>>) -> (i32, i32) {
    %c0_i32 = arith.constant 0 : i32
    %c0_i32_0 = arith.constant 0 : i32
    %c0_i32_1 = arith.constant 0 : i32
    return %c0_i32, %c0_i32_0 : i32, i32
  }
  func.func @transform_1(%arg0: i32, %arg1: memref<1x8xi32, #tpu.memory_space<smem>>) -> (i32, i32) {
    %c0_i32 = arith.constant 0 : i32
    %c0_i32_0 = arith.constant 0 : i32
    %c0_i32_1 = arith.constant 0 : i32
    return %c0_i32, %c0_i32_0 : i32, i32
  }
  func.func @transform_2(%arg0: i32, %arg1: memref<1x8xi32, #tpu.memory_space<smem>>) -> (i32, i32) {
    %c0_i32 = arith.constant 0 : i32
    %c0_i32_0 = arith.constant 0 : i32
    %c0_i32_1 = arith.constant 0 : i32
    return %c0_i32, %c0_i32_0 : i32, i32
  }
  func.func @transform_3(%arg0: i32, %arg1: memref<1x8xi32, #tpu.memory_space<smem>>) -> (i32, i32) {
    %c0_i32 = arith.constant 0 : i32
    %c0_i32_0 = arith.constant 0 : i32
    %c0_i32_1 = arith.constant 0 : i32
    return %c0_i32, %c0_i32_0 : i32, i32
  }
  func.func @transform_4(%arg0: i32, %arg1: memref<1x8xi32, #tpu.memory_space<smem>>) -> (i32, i32, i32) {
    %c0_i32 = arith.constant 0 : i32
    %c0_i32_0 = arith.constant 0 : i32
    %c0_i32_1 = arith.constant 0 : i32
    return %arg0, %c0_i32, %c0_i32_0 : i32, i32, i32
  }
}

</mosaic_0001>

<bundles_post_ra>
// kernel: tpu_custom_call.1
= control target key start
LH: loop header
LB: loop body
LE: loop exit
PB: predicated region body
PF: predicated region fallthrough
CT: control target
= control target key end

     0   :  { %s485_s18 = smov [#allocation4]   ;;  %s583_s0 = inlined_call_operand.hbm [shape: s32[1,8], index: 0, kind: input, shape index: {}]   ;;  %s584_s1 = inlined_call_operand.hbm [shape: f32[32,48], index: 1, kind: input, shape index: {}]   ;;  %s585_s2 = inlined_call_operand.hbm [shape: f32[16,48], index: 2, kind: input, shape index: {}]   ;;  %s586_s3 = inlined_call_operand.vmem [shape: f32[1,16], index: 3, kind: input, shape index: {}]   ;;  %s587_s4 = inlined_call_operand.hbm [shape: f32[8,16], index: 4, kind: input, shape index: {}]   ;;  %s588_s5 = inlined_call_operand.hbm [shape: f32[1,8,16], index: 5, kind: output, shape index: {}]  }
   0x1   :  { %11 = dma.hbm_to_smem %s583_s0, 16, %s485_s18, [#allocation3] }
   0x2   :  { %477 = dma.done.wait [#allocation3], 16 }
   0x3   :  { %478 = vsyncadd [#allocation3], 4294967280 }
   0x4   :  { %13 = sfence }
   0x5   :  { %14 = vsyncpa [#allocation6], 0 }
   0x6   :  { %15 = vsyncpa [#allocation9], 0 }
   0x7   :  { %16 = vsyncpa [#allocation7], 0  ;;  %s486_s21 = smov [#allocation8]   ;;  %s487_s23 = smov [#allocation5]  }
   0x8   :  { %s34_s22 = sshll.u32 %s486_s21, 4  ;;  %s22_s24 = sshll.u32 %s487_s23, 4  ;;  %s35_s22 = int_to_ptr.vmem [resolvable:$true] %s34_s22  ;;  %s23_s24 = int_to_ptr.vmem [resolvable:$true] %s22_s24 }
   0x9   :  { %s405_s25 = scalar_lea.vmem %s35_s22, 256  ;;  %p410_p1 = scmp.lt.s32.totalorder %s35_s22, %s35_s22 }
   0xa   :  { %p406_p0 = scmp.ne.s32.totalorder %s35_s22, %s405_s25  ;;  %p411_p2 = scmp.lt.s32.totalorder %s405_s25, %s405_s25 }
   0xc   :  { %p412_p3 = por %p411_p2, %p410_p1 }
   0xe   :  { %p413_p4 = pnand %p412_p3, %p406_p0 }
  0x10   :  { %416 = shalt.err (!%p413_p4)
}
  0x11   :  { %s488_s0 = smov 128   ;;  %s489_s26 = smov 8  }
  0x12   :  { %40 = dma.hbm_to_vmem [thread:$0]  %s585_s2, 256, %s35_s22, [#allocation9], %s488_s0, %s488_s0, %s489_s26  }
  0x13   :  { %s425_s29 = scalar_lea.vmem %s23_s24, 512  ;;  %p430_p6 = scmp.lt.s32.totalorder %s23_s24, %s23_s24 }
  0x14   :  { %p426_p5 = scmp.ne.s32.totalorder %s23_s24, %s425_s29  ;;  %p431_p7 = scmp.lt.s32.totalorder %s425_s29, %s425_s29 }
  0x16   :  { %p432_p8 = por %p431_p7, %p430_p6 }
  0x18   :  { %p433_p9 = pnand %p432_p8, %p426_p5 }
  0x1a   :  { %436 = shalt.err (!%p433_p9)
}
  0x1b   :  { %28 = dma.hbm_to_vmem [thread:$0]  %s584_s1, 512, %s23_s24, [#allocation6], %s488_s0, %s488_s0, %s489_s26  }
  0x1c   :  { %s490_s7 = smov [#allocation10]  }
  0x1d   :  { %s49_s8 = sshll.u32 %s490_s7, 4  ;;  %s50_s8 = int_to_ptr.vmem [resolvable:$true] %s49_s8 }
  0x1e   :  { %s445_s9 = scalar_lea.vmem %s50_s8, 128  ;;  %p450_p11 = scmp.lt.s32.totalorder %s50_s8, %s50_s8 }
  0x1f   :  { %p446_p10 = scmp.ne.s32.totalorder %s50_s8, %s445_s9  ;;  %p451_p12 = scmp.lt.s32.totalorder %s445_s9, %s445_s9 }
  0x21   :  { %p452_p13 = por %p451_p12, %p450_p11 }
  0x23   :  { %p453_p0 = pnand %p452_p13, %p446_p10 }
  0x25   :  { %456 = shalt.err (!%p453_p0)
}
  0x26   :  { %52 = dma.hbm_to_vmem [thread:$0]  %s587_s4, 128, %s50_s8, [#allocation9]  }
  0x27   :  { %479 = dma.done.wait [#allocation6], 512  }
  0x28   :  { %480 = vsyncadd [#allocation6], 4294966784 }
  0x29   :  { %481 = dma.done.wait [#allocation9], 384  }
  0x2a   :  { %482 = vsyncadd [#allocation9], 4294966912  ;;  %v76_v0 = vlaneseq  ;;  %v491_v1 = vmov 0.0   ;;  %s83_s1 = sld [smem:[#allocation4]]  ;;  %vm492_vm0 = vmmov 0   ;;  %vm67_vm2 = vcmask 130048  }
  0x2b   :  { %352 = vmatprep.subr.mxu0 %v491_v1  ;;  %363 = vmatprep.subr.mxu1 %v491_v1  ;;  %s332_s11 = sld [smem:[#allocation4 + $0x1]]  ;;  %v72_v3 = vld [vmem:[#allocation5 + $0x18] sm:$0xff]  ;;  %v71_v4 = vld [vmem:[#allocation5 + $0x10] sm:$0xff]  ;;  %v74_v5 = vld [vmem:[#allocation8 + $0x8] sm:$0xff]  ;;  %s493_s19 = smov 32   ;;  %vm124_vm10 = vcmask 261120  }
  0x2c   :  { %367 = vmatprep.mubr.msk.f32.mxu1 %vm492_vm0, %v491_v1  ;;  %360 = vmatprep.mubr.msk.f32.mxu0 %vm492_vm0, %v491_v1  ;;  %v77_v2 = vshrl.u32 %v76_v0, 7  ;;  %s544_s12 = sld [smem:[#allocation4 + $0x2]]  ;;  %v73_v7 = vld [vmem:[#allocation8] sm:$0xff]  ;;  %v66_v8 = vld [vmem:[#allocation10] sm:$0xff]  ;;  %v70_v11 = vld [vmem:[#allocation5 + $0x8] sm:$0xff]  ;;  %v79_v20 = vand.u32 127, %v76_v0 }
  0x2d   :  { %s546_s4 = sld [smem:[#allocation4 + $0x3]]  ;;  %353 = vmatpush3.msra.mxu0 %v72_v3  ;;  %364 = vmatpush3.msra.mxu1 %v74_v5  ;;  %68 = vst.msk [vmem:[#allocation2] sm:$0xff] %vm67_vm2, %v66_v8  ;;  %v343_v14 = vld [vmem:[%s586_s3] ss:$0 sm:$0xff]  ;;  %v69_v17 = vld [vmem:[#allocation5] sm:$0xff]  ;;  %s494_s3 = smov 96  }
  0x2e   :  { %vm81_vm1 = vcmp.eq.s32.totalorder %v77_v2, 0  ;;  %s548_s13 = sld [smem:[#allocation4 + $0x4]]  ;;  %vm86_vm3 = vcmp.eq.s32.totalorder %v77_v2, 1  ;;  %vm91_vm4 = vcmp.eq.s32.totalorder %v77_v2, 2  ;;  %vm96_vm5 = vcmp.eq.s32.totalorder %v77_v2, 3  ;;  %354 = vmatprep.subr.mxu0 %v491_v1  ;;  %365 = vmatprep.subr.mxu1 %v491_v1  ;;  %s495_s20 = smov 16  }
  0x2f   :  { %s550_s14 = sld [smem:[#allocation4 + $0x5]]  ;;  %vm101_vm6 = vcmp.eq.s32.totalorder %v77_v2, 4  ;;  %355 = vmatpush3.msra.mxu0 %v71_v4  ;;  %366 = vmatpush3.msra.mxu1 %v73_v7  ;;  %vm106_vm7 = vcmp.eq.s32.totalorder %v77_v2, 5  ;;  %vm111_vm8 = vcmp.eq.s32.totalorder %v77_v2, 6  ;;  %vm116_vm9 = vcmp.eq.s32.totalorder %v77_v2, 7  ;;  %s496_s21 = smov 112  }
  0x30   :  { %v84_v6 = vstv %s83_s1  ;;  %s552_s15 = sld [smem:[#allocation4 + $0x6]]  ;;  %356 = vmatprep.subr.mxu0 %v491_v1  ;;  %284 = vrot.lane.b32.xlu0 %v343_v14, %s493_s19  ;;  %s497_s22 = smov [#allocation11]  }
  0x31   :  { %v85_v9 = vsel %vm81_vm1, %v84_v6, 0  ;;  %v89_v10 = vstv %s332_s11  ;;  %s554_s16 = sld [smem:[#allocation4 + $0x7]]  ;;  %357 = vmatpush3.msra.mxu0 %v70_v11  ;;  %s322_s23 = sshll.u32 %s497_s22, 4  ;;  %s323_s23 = int_to_ptr.vmem [resolvable:$true] %s322_s23 }
  0x32   :  { %v90_v12 = vsel %vm86_vm3, %v89_v10, %v85_v9  ;;  %v94_v13 = vstv %s544_s12  ;;  %358 = vmatprep.subr.mxu0 %v491_v1  ;;  %s457_s24 = scalar_lea.vmem %s323_s23, 128  ;;  %p462_p2 = scmp.lt.s32.totalorder %s323_s23, %s323_s23 }
  0x33   :  { %v95_v15 = vsel %vm91_vm4, %v94_v13, %v90_v12  ;;  %v99_v16 = vstv %s546_s4  ;;  %359 = vmatpush3.msra.mxu0 %v69_v17  ;;  %p458_p1 = scmp.ne.s32.totalorder %s323_s23, %s457_s24  ;;  %p463_p3 = scmp.lt.s32.totalorder %s457_s24, %s457_s24 }
  0x34   :  { %v100_v18 = vsel %vm96_vm5, %v99_v16, %v95_v15  ;;  %v104_v19 = vstv %s548_s13  ;;  %v80_v28 = vld [vmem:[#allocation2] sm:$0xff] }
  0x35   :  { %v105_v21 = vsel %vm101_vm6, %v104_v19, %v100_v18  ;;  %v109_v22 = vstv %s550_s14  ;;  %368 = vmatmul.mubr.msk.f32.vlgmr.msra.gmra.mxu1 %vm67_vm2, %v80_v28  ;;  %p464_p4 = por %p463_p3, %p462_p2 }
  0x36   :  { %v110_v23 = vsel %vm106_vm7, %v109_v22, %v105_v21  ;;  %v114_v24 = vstv %s552_s15 }
  0x37   :  { %v115_v25 = vsel %vm111_vm8, %v114_v24, %v110_v23  ;;  %v119_v26 = vstv %s554_s16  ;;  %p465_p5 = pnand %p464_p4, %p458_p1 }
  0x38   :  { %v120_v27 = vsel %vm116_vm9, %v119_v26, %v115_v25 }
  0x39   :  { %vm121_vm11 = vcmp.eq.s32.totalorder %v79_v20, %v120_v27 }
  0x3a   :  { %v339_v29 = vsel %vm121_vm11, 1.0, %v491_v1 }
  0x3b   :  { %361 = vmatmul.mubr.msk.f32.vlgmr.msra.gmra.mxu0 %vm124_vm10, %v339_v29 }
  0xa2   :  { %v285_v30 = vpop.permute.xlu0 %284 }
  0xf5   :  { %v268_v31 = vpop.f32.mrf.mxu1 }
  0xf6   :  { %v287_v32 = vadd.f32 %v285_v30, %v268_v31 }
  0xf7   :  { %v369_v34 = vpop.f32.mrf.mxu1 }
  0xf8   :  { %289 = vrot.lane.b32.xlu0 %v287_v32, %s494_s3 }
  0xfb   :  { %v194_v33 = vpop.f32.mrf.mxu0 }
  0xfc   :  { %305 = vrot.lane.b32.xlu0 %v80_v28, %s495_s20  ;;  %v272_v36 = vadd.f32 %v268_v31, %v194_v33 }
  0xfd   :  { %v362_v35 = vpop.f32.mrf.mxu0 }
  0xfe   :  { %v342_v37 = vmul.f32 -1.442695, %v272_v36 }
 0x100   :  { %383 = vpow2.f32 %v342_v37 }
 0x10d   :  { %v384_v38 = vpop.eup %383 }
 0x10e   :  { %v276_v39 = vadd.f32 1.0, %v384_v38 }
 0x110   :  { %385 = vrcp.f32 %v276_v39 }
 0x11d   :  { %v386_v40 = vpop.eup %385 }
 0x11e   :  { %v299_v47 = vsub.f32 1.0, %v386_v40 }
 0x16a   :  { %v290_v41 = vpop.permute.xlu0 %289 }
 0x16b   :  { %v292_v42 = vmul.f32 %v386_v40, %v290_v41 }
 0x16d   :  { %294 = vrot.lane.b32.xlu1 %v292_v42, %s493_s19 }
 0x16e   :  { %v306_v46 = vpop.permute.xlu0 %305 }
 0x16f   :  { %v308_v49 = vmul.f32 %v386_v40, %v306_v46 }
 0x1df   :  { %v295_v43 = vpop.permute.xlu1 %294 }
 0x1e0   :  { %v297_v44 = vadd.f32 %v295_v43, %v194_v33 }
 0x1e2   :  { %387 = vtanh.f32 %v297_v44 }
 0x1ef   :  { %v388_v45 = vpop.eup %387 }
 0x1f0   :  { %301 = vrot.lane.b32.xlu1 %v388_v45, %s496_s21 }
 0x262   :  { %v302_v48 = vpop.permute.xlu1 %301 }
 0x263   :  { %v304_v50 = vmul.f32 %v302_v48, %v299_v47 }
 0x265   :  { %v309_v51 = vadd.f32 %v308_v49, %v304_v50 }
 0x267   :  { %311 = vrot.lane.b32.xlu1 %v309_v51, %s496_s21 }
 0x2d9   :  { %v312_v52 = vpop.permute.xlu1 %311 }
 0x2da   :  { %315 = vst.msk [vmem:[#allocation2] sm:$0xff] %vm67_vm2, %v312_v52  ;;  %314 = vst.msk [vmem:[#allocation11] sm:$0xff] %vm67_vm2, %v312_v52 }
 0x2db   :  { %468 = shalt.err (!%p465_p5)
}
 0x2dc   :  { %325 = dma.vmem_to_hbm [thread:$0]  %s323_s23, 128, %s588_s5, [#allocation7]  }
 0x2dd   :  { %483 = dma.done.wait [#allocation7], 128  }
 0x2de   :  { %484 = vsyncadd [#allocation7], 4294967168 }
 0x2df   :  { %329 = vsyncpa [#allocation6], 1 }
 0x2e0   :  { %330 = vsyncpa [#allocation9], 1 }
 0x2e1   :  { %331 = vsyncpa [#allocation7], 1 }

</bundles_post_ra>
